<compile_context>
chip_gen: v7x
topology: tpu7x:2x2x1
jax: 0.10.0
libtpu: 0.0.40
codegen_flags: <defaults>
</compile_context>

<pallas_src>
import functools

import jax
import jax.numpy as jnp
from jax.experimental import pallas as pl
from jax.experimental.pallas import tpu as pltpu


# ----------------------------------------------------------------------------
# Fused kernel: one grid step == one claim (sequence).
# ----------------------------------------------------------------------------
def fused_encoder_kernel(ids_ref, vidx_ref, embed_ref, verschil_ref, *rest,
                         hidden_dim, num_layers, alpha):
    w_refs = rest[:num_layers]                  # (2*Din, 8H) bf16, gates [i|g|o|f]
    b_refs = rest[num_layers:2 * num_layers]    # (1, 8H) f32
    out_ref = rest[2 * num_layers]              # (8, OUT_PAD) f32

    H = hidden_dim
    S = ids_ref.shape[0]
    V, E = embed_ref.shape

    # ---- word-embedding gather as a one-hot matmul (table is VMEM-resident) ---
    # TODO(synk): for a real 30k+ HF tokenizer vocab keep word_embeds in HBM
    # (memory_space=pl.ANY) and DMA-gather the S rows instead of one-hot matmul.
    ids = ids_ref[...]                                                    # (S, 1) i32
    onehot = (jax.lax.broadcasted_iota(jnp.int32, (S, V), 1) == ids
              ).astype(jnp.bfloat16)                                      # (S, V)
    x = jnp.dot(onehot, embed_ref[...],
                preferred_element_type=jnp.float32)                       # (S, E) f32

    # ---- F.normalize(p=2, dim=1): L2 over the *sequence* axis; Dropout(eval)+ReLU
    norm = jnp.sqrt(jnp.sum(x * x, axis=0, keepdims=True))
    x = x / jnp.maximum(norm, 1e-12)
    x = jnp.maximum(x, 0.0)

    # ---- bidirectional LSTM stack: fwd & bwd lane-packed, one matmul / layer --
    # a[:, :Din] = forward stream, a[:, Din:] = backward stream (un-reversed:
    # with h0=c0=0 a single-step LSTM is row-independent).
    a = jnp.concatenate([x, x], axis=-1)                                  # (S, 2E)
    skip = jnp.zeros((S, 2 * H), jnp.float32)                             # running skip acc
    h = None
    for l in range(num_layers):
        if l != 0:
            # dropout(eval)+ReLU on the previous output, plus accumulated skips
            a = jnp.maximum(a, 0.0) + skip
        gates = jnp.dot(a.astype(jnp.bfloat16), w_refs[l][...],
                        preferred_element_type=jnp.float32) + b_refs[l][...]
        # gate lanes: [ i(2H) | g(2H) | o(2H) | f_dead(2H) ]
        ga = gates[:, 0:4 * H]                # [i | g]  (full 128-lane vreg for H=32)
        gb = gates[:, 4 * H:8 * H]            # [o | f_dead]
        # half-width XLU roll aligns tanh(g) under sigmoid(i); direction-safe.
        ig = jax.nn.sigmoid(ga) * jnp.tanh(pltpu.roll(ga, shift=2 * H, axis=1))
        h_full = jax.nn.sigmoid(gb) * jnp.tanh(ig)                        # lanes 0:2H = h
        h = h_full[:, 0:2 * H]                                            # (S, 2H) = [fwd|bwd]
        if l + 1 < num_layers:
            skip = skip + jnp.maximum(h, 0.0)
        a = h

    # ---- enc = cat(relu(h_fwd[last token]), relu(h_bwd[first token])) --------
    hf_last = jnp.maximum(h[S - 1:S, 0:H], 0.0)                           # (1, H)
    hb_first = jnp.maximum(h[0:1, H:2 * H], 0.0)                          # (1, H)
    enc = jnp.concatenate([hf_last, hb_first], axis=-1)                   # (1, 2H)

    # ---- time blend: ONE multi-hot matvec over the verschil table ------------
    vidx = vidx_ref[...]                                                  # (Nmax, 1), -1 = pad
    NV = verschil_ref.shape[0]
    sel = (jax.lax.broadcasted_iota(jnp.int32, (vidx.shape[0], NV), 1) == vidx)
    counts = jnp.sum(sel.astype(jnp.bfloat16), axis=0, keepdims=True)     # (1, NV) multi-hot
    tijd = jnp.dot(counts, verschil_ref[...],
                   preferred_element_type=jnp.float32)                    # (1, 2H)
    n = jnp.sum((vidx >= 0).astype(jnp.float32))
    blended = jnp.where(
        n > 0, alpha * enc + (1.0 - alpha) * tijd / jnp.maximum(n, 1.0), enc)

    # ---- (8, OUT_PAD) tile-aligned output: row0 = blended, row1 = enc --------
    out_ref[...] = jnp.zeros_like(out_ref)
    out_ref[0:2, 0:2 * H] = jnp.concatenate([blended, enc], axis=0)


# ----------------------------------------------------------------------------
# Wrapper: one pallas_call per BATCH of claims.
# ----------------------------------------------------------------------------
@functools.partial(jax.jit, static_argnames=("alpha",))
def encoder_forward(packed, token_ids, verschil_idx, *, alpha):
    """token_ids: (B, S) int32.  verschil_idx: (B, Nmax) int32, -1 = padding."""
    num_layers = len(packed["w"])
    H = packed["w"][0].shape[1] // 8
    B, S = token_ids.shape
    Nmax = verschil_idx.shape[1]
    if Nmax == 0:
        verschil_idx = jnp.full((B, 1), -1, jnp.int32)
        Nmax = 1

    ids3 = token_ids.astype(jnp.int32).reshape(B, S, 1)
    vidx3 = verschil_idx.astype(jnp.int32).reshape(B, Nmax, 1)
    embed = packed["word_embeds"]
    verschil = packed["verschil"]
    V, E = embed.shape
    NV = verschil.shape[0]

    out_pad = max(128, -(-2 * H // 128) * 128)

    kernel = functools.partial(fused_encoder_kernel, hidden_dim=H,
                               num_layers=num_layers, alpha=float(alpha))

    def resident(shape):  # VMEM-resident across the whole grid
        return pl.BlockSpec(shape, lambda b: (0, 0))

    in_specs = ([pl.BlockSpec((None, S, 1), lambda b: (b, 0, 0)),
                 pl.BlockSpec((None, Nmax, 1), lambda b: (b, 0, 0)),
                 resident(embed.shape),
                 resident(verschil.shape)]
                + [resident(w.shape) for w in packed["w"]]
                + [resident(bb.shape) for bb in packed["b"]])
    out_specs = pl.BlockSpec((None, 8, out_pad), lambda b: (b, 0, 0))

    # advisory cost estimate so XLA schedules around this small call correctly
    flops = 2 * S * V * E + 2 * NV * 2 * H
    for w in packed["w"]:
        flops += 2 * S * w.shape[0] * w.shape[1]
    flops *= B
    transcendentals = B * num_layers * 16 * S * H
    bytes_accessed = (embed.size * embed.dtype.itemsize
                      + verschil.size * verschil.dtype.itemsize
                      + sum(w.size * w.dtype.itemsize for w in packed["w"])
                      + sum(bb.size * bb.dtype.itemsize for bb in packed["b"])
                      + B * (S * 4 + Nmax * 4 + 8 * out_pad * 4))

    slab = pl.pallas_call(
        kernel,
        grid=(B,),
        out_shape=jax.ShapeDtypeStruct((B, 8, out_pad), jnp.float32),
        in_specs=in_specs,
        out_specs=out_specs,
        compiler_params=pltpu.CompilerParams(dimension_semantics=("parallel",)),
        cost_estimate=pl.CostEstimate(flops=flops,
                                      transcendentals=transcendentals,
                                      bytes_accessed=bytes_accessed),
    )(ids3, vidx3, embed, verschil, *packed["w"], *packed["b"])

    out = slab[:, 0, :2 * H]     # blended output (== enc where no time info)
    enc = slab[:, 1, :2 * H]     # encodingClaim
    return out, enc


# ----------------------------------------------------------------------------
# Parameter construction (deterministic, synthetic — no checkpoint loading).
# Per direction/layer: w = W_ih^T (Din, 4H), b = b_ih + b_hh folded (1, 4H),
# PyTorch gate order i|f|g|o.
# ----------------------------------------------------------------------------
def init_params(key, vocab_size, embedding_dim, hidden_dim, num_layers):
    keys = jax.random.split(key, 2 + 4 * num_layers)
    lim = (6.0 / (vocab_size + embedding_dim)) ** 0.5
    raw = {
        "word_embeds": jax.random.uniform(
            keys[0], (vocab_size, embedding_dim), jnp.float32, -lim, lim),
        "verschil": jax.random.normal(keys[1], (86, 2 * hidden_dim), jnp.float32),
        "fwd": [], "bwd": [],
    }
    k = 1.0 / (hidden_dim ** 0.5)
    for layer in range(num_layers):
        din = embedding_dim if layer == 0 else hidden_dim
        kw = keys[2 + 4 * layer: 2 + 4 * (layer + 1)]
        for name, (kw_w, kw_b) in (("fwd", kw[:2]), ("bwd", kw[2:])):
            w = jax.random.uniform(kw_w, (din, 4 * hidden_dim), jnp.float32, -k, k)
            b = jax.random.uniform(kw_b, (1, 4 * hidden_dim), jnp.float32, -k, k)
            raw[name].append({"w": w, "b": b})
    return raw


def pack_params(raw, hidden_dim, num_layers):
    """Block-diagonal, gate-reordered (2*Din, 8H) bf16 weights, gates [i|g|o|f]."""
    H = hidden_dim
    order = (0, 2, 3, 1)                                   # i, g, o, f (f is dead: c0==0)
    ws, bs = [], []
    for l in range(num_layers):
        wf, bf = raw["fwd"][l]["w"], raw["fwd"][l]["b"]
        wb, bb = raw["bwd"][l]["w"], raw["bwd"][l]["b"]
        din = wf.shape[0]
        wc = jnp.zeros((2 * din, 8 * H), jnp.float32)
        bc = jnp.zeros((1, 8 * H), jnp.float32)
        for gidx, src in enumerate(order):
            wc = wc.at[:din, (2 * gidx) * H:(2 * gidx + 1) * H].set(wf[:, src * H:(src + 1) * H])
            wc = wc.at[din:, (2 * gidx + 1) * H:(2 * gidx + 2) * H].set(wb[:, src * H:(src + 1) * H])
            bc = bc.at[:, (2 * gidx) * H:(2 * gidx + 1) * H].set(bf[:, src * H:(src + 1) * H])
            bc = bc.at[:, (2 * gidx + 1) * H:(2 * gidx + 2) * H].set(bb[:, src * H:(src + 1) * H])
        ws.append(wc.astype(jnp.bfloat16))
        bs.append(bc)                                      # biases stay f32
    return {"word_embeds": raw["word_embeds"].astype(jnp.bfloat16),
            "verschil": raw["verschil"].astype(jnp.bfloat16),
            "w": ws, "b": bs}


# ----------------------------------------------------------------------------
# Pure-jnp reference (mirrors the PyTorch structure; uses the same bf16-rounded
# stored weights but f32 math) — for numerical validation only.
# ----------------------------------------------------------------------------
def _round_bf16(x):
    return x.astype(jnp.bfloat16).astype(jnp.float32)


def _lstm_cell_ref(x, w, b):
    gates = x @ w + b
    H = w.shape[1] // 4
    i = jax.nn.sigmoid(gates[:, 0:H])
    g = jnp.tanh(gates[:, 2 * H:3 * H])
    o = jax.nn.sigmoid(gates[:, 3 * H:4 * H])
    return o * jnp.tanh(i * g)


def encoder_forward_ref(raw, token_ids, verschil_idx, alpha, num_layers):
    x = _round_bf16(raw["word_embeds"])[token_ids][None]          # (1, S, E)
    norm = jnp.sqrt(jnp.sum(x * x, axis=1, keepdims=True))
    x = jnp.maximum(x / jnp.maximum(norm, 1e-12), 0.0)
    in_f, in_b = x[0], x[0, ::-1, :]
    outs_f, outs_b = [], []
    hf = hb = None
    for l in range(num_layers):
        if l != 0:
            in_f, in_b = jnp.maximum(in_f, 0.0), jnp.maximum(in_b, 0.0)
            for j in range(l):
                in_f = in_f + jnp.maximum(outs_f[j], 0.0)
                in_b = in_b + jnp.maximum(outs_b[j], 0.0)
        hf = _lstm_cell_ref(in_f, _round_bf16(raw["fwd"][l]["w"]), raw["fwd"][l]["b"])
        hb = _lstm_cell_ref(in_b, _round_bf16(raw["bwd"][l]["w"]), raw["bwd"][l]["b"])
        outs_f.append(hf)
        outs_b.append(hb)
        in_f, in_b = hf, hb
    enc = jnp.concatenate([jnp.maximum(hf[-1], 0.0), jnp.maximum(hb[-1], 0.0)])
    n = verschil_idx.shape[0]
    if n > 0:
        tijd = _round_bf16(raw["verschil"])[verschil_idx].sum(axis=0)
        return alpha * enc + (1.0 - alpha) * tijd / n, enc
    return enc, enc


if __name__ == "__main__":
    embedding_dim = 32
    hidden_dim = 32
    num_layers = 2
    alpha = 0.7
    vocab_size = 100
    seq_len = 8
    batch = 4

    key = jax.random.PRNGKey(0)
    k_params, k_tok = jax.random.split(key)
    raw = init_params(k_params, vocab_size, embedding_dim, hidden_dim, num_layers)
    packed = pack_params(raw, hidden_dim, num_layers)

    # synthetic tokenized claims (stand in for the HF tokenizer output)
    token_ids = jax.random.randint(k_tok, (batch, seq_len), 0, vocab_size)
    # synthetic already-filtered "verschil" indices per claim; -1 = padding
    # (one claim has repeats, one has no time info -> returns enc unchanged)
    verschil_lists = [[3, 10, 42], [7, 7, 85, 12], [], [0, 5]]
    n_max = max(max(len(v) for v in verschil_lists), 1)
    verschil_idx = jnp.asarray(
        [v + [-1] * (n_max - len(v)) for v in verschil_lists], dtype=jnp.int32)

    out, enc = encoder_forward(packed, token_ids, verschil_idx, alpha=alpha)
    out = jax.block_until_ready(out)

    assert out.shape == (batch, 2 * hidden_dim)
    assert enc.shape == (batch, 2 * hidden_dim)

    # bf16 weight storage + bf16 MXU activations -> slightly looser tolerance
    for b in range(batch):
        vb = jnp.asarray(verschil_lists[b], dtype=jnp.int32)
        out_ref_b, enc_ref_b = encoder_forward_ref(raw, token_ids[b], vb, alpha,
                                                   num_layers)
        assert jnp.allclose(enc[b], enc_ref_b, atol=1e-2, rtol=1e-2), f"enc mismatch {b}"
        assert jnp.allclose(out[b], out_ref_b, atol=1e-2, rtol=1e-2), f"out mismatch {b}"

    print("KERNEL_OK")
</pallas_src>

<mosaic_0001>
module attributes {stable_mosaic.version = 11 : i64} {
  func.func @fused_encoder_kernel(%arg0: i32, %arg1: memref<1x8x1xi32, #tpu.memory_space<vmem>>, %arg2: memref<1x4x1xi32, #tpu.memory_space<vmem>>, %arg3: memref<100x32xbf16, #tpu.memory_space<vmem>>, %arg4: memref<86x64xbf16, #tpu.memory_space<vmem>>, %arg5: memref<64x256xbf16, #tpu.memory_space<vmem>>, %arg6: memref<64x256xbf16, #tpu.memory_space<vmem>>, %arg7: memref<1x256xf32, #tpu.memory_space<vmem>>, %arg8: memref<1x256xf32, #tpu.memory_space<vmem>>, %arg9: memref<1x8x128xf32, #tpu.memory_space<vmem>>) attributes {dimension_semantics = [#tpu.dimension_semantics<parallel>], iteration_bounds = array<i64: 4>, scalar_prefetch = 0 : i64, scratch_operands = 0 : i64, tpu.core_type = #tpu.core_type<tc>, window_params = [{transform_indices = @transform_0, window_bounds = array<i64: 1, 8, 1>}, {transform_indices = @transform_1, window_bounds = array<i64: 1, 4, 1>}, {pipeline_mode = #tpu.pipeline_mode<synchronous>, transform_indices = @transform_2, window_bounds = array<i64: 100, 32>}, {pipeline_mode = #tpu.pipeline_mode<synchronous>, transform_indices = @transform_3, window_bounds = array<i64: 86, 64>}, {pipeline_mode = #tpu.pipeline_mode<synchronous>, transform_indices = @transform_4, window_bounds = array<i64: 64, 256>}, {pipeline_mode = #tpu.pipeline_mode<synchronous>, transform_indices = @transform_5, window_bounds = array<i64: 64, 256>}, {pipeline_mode = #tpu.pipeline_mode<synchronous>, transform_indices = @transform_6, window_bounds = array<i64: 1, 256>}, {pipeline_mode = #tpu.pipeline_mode<synchronous>, transform_indices = @transform_7, window_bounds = array<i64: 1, 256>}, {transform_indices = @transform_8, window_bounds = array<i64: 1, 8, 128>}]} {
    %c0 = arith.constant 0 : index
    %c0_0 = arith.constant 0 : index
    %c0_1 = arith.constant 0 : index
    %0 = vector.load %arg1[%c0, %c0_0, %c0_1] : memref<1x8x1xi32, #tpu.memory_space<vmem>>, vector<1x8x1xi32>
    %1 = vector.shape_cast %0 : vector<1x8x1xi32> to vector<8x1xi32>
    %2 = tpu.iota {dimensions = array<i32: 1>} : vector<8x100xi32>
    %3 = vector.broadcast %1 : vector<8x1xi32> to vector<8x100xi32>
    %4 = arith.cmpi eq, %2, %3 : vector<8x100xi32>
    %5 = arith.extui %4 : vector<8x100xi1> to vector<8x100xi32>
    %6 = arith.sitofp %5 : vector<8x100xi32> to vector<8x100xf32>
    %7 = arith.truncf %6 : vector<8x100xf32> to vector<8x100xbf16>
    %c0_2 = arith.constant 0 : index
    %c0_3 = arith.constant 0 : index
    %8 = vector.load %arg3[%c0_2, %c0_3] : memref<100x32xbf16, #tpu.memory_space<vmem>>, vector<100x32xbf16>
    %cst = arith.constant dense<0.000000e+00> : vector<8x32xf32>
    %9 = tpu.matmul %7, %8, %cst {dimension_numbers = #tpu.dot_dimension_numbers<[1], [0], [0], [1], [0, 0, 1, 1], [], []>} : vector<8x100xbf16>, vector<100x32xbf16>, vector<8x32xf32> -> vector<8x32xf32>
    %10 = arith.mulf %9, %9 : vector<8x32xf32>
    %cst_4 = arith.constant dense<0.000000e+00> : vector<32xf32>
    %11 = vector.multi_reduction <add>, %10, %cst_4 [0] : vector<8x32xf32> to vector<32xf32>
    %12 = vector.shape_cast %11 : vector<32xf32> to vector<1x32xf32>
    %13 = math.sqrt %12 : vector<1x32xf32>
    %cst_5 = arith.constant 9.99999996E-13 : f32
    %14 = vector.broadcast %cst_5 : f32 to vector<1x32xf32>
    %15 = arith.maximumf %13, %14 : vector<1x32xf32>
    %16 = vector.broadcast %15 : vector<1x32xf32> to vector<8x32xf32>
    %17 = arith.divf %9, %16 : vector<8x32xf32>
    %cst_6 = arith.constant 0.000000e+00 : f32
    %18 = vector.broadcast %cst_6 : f32 to vector<8x32xf32>
    %19 = arith.maximumf %17, %18 : vector<8x32xf32>
    %20 = tpu.concatenate %19, %19 in 1 : vector<8x32xf32>, vector<8x32xf32> -> vector<8x64xf32>
    %cst_7 = arith.constant 0.000000e+00 : f32
    %21 = vector.broadcast %cst_7 : f32 to vector<8x64xf32>
    %22 = arith.truncf %20 : vector<8x64xf32> to vector<8x64xbf16>
    %c0_8 = arith.constant 0 : index
    %c0_9 = arith.constant 0 : index
    %23 = vector.load %arg5[%c0_8, %c0_9] : memref<64x256xbf16, #tpu.memory_space<vmem>>, vector<64x256xbf16>
    %cst_10 = arith.constant dense<0.000000e+00> : vector<8x256xf32>
    %24 = tpu.matmul %22, %23, %cst_10 {dimension_numbers = #tpu.dot_dimension_numbers<[1], [0], [0], [1], [0, 0, 1, 1], [], []>} : vector<8x64xbf16>, vector<64x256xbf16>, vector<8x256xf32> -> vector<8x256xf32>
    %c0_11 = arith.constant 0 : index
    %c0_12 = arith.constant 0 : index
    %25 = vector.load %arg7[%c0_11, %c0_12] : memref<1x256xf32, #tpu.memory_space<vmem>>, vector<1x256xf32>
    %26 = vector.broadcast %25 : vector<1x256xf32> to vector<8x256xf32>
    %27 = arith.addf %24, %26 : vector<8x256xf32>
    %28 = vector.extract_strided_slice %27 {offsets = [0, 0], sizes = [8, 128], strides = [1, 1]} : vector<8x256xf32> to vector<8x128xf32>
    %29 = vector.extract_strided_slice %27 {offsets = [0, 128], sizes = [8, 128], strides = [1, 1]} : vector<8x256xf32> to vector<8x128xf32>
    %30 = arith.negf %28 : vector<8x128xf32>
    %31 = math.exp %30 : vector<8x128xf32>
    %cst_13 = arith.constant 1.000000e+00 : f32
    %32 = vector.broadcast %cst_13 : f32 to vector<8x128xf32>
    %33 = arith.addf %32, %31 : vector<8x128xf32>
    %34 = arith.divf %32, %33 : vector<8x128xf32>
    %c64_i32 = arith.constant 64 : i32
    %35 = tpu.dynamic_rotate %28 by %c64_i32 dim 1 : vector<8x128xf32>, i32 -> vector<8x128xf32>
    %36 = math.tanh %35 : vector<8x128xf32>
    %37 = arith.mulf %34, %36 : vector<8x128xf32>
    %38 = arith.negf %29 : vector<8x128xf32>
    %39 = math.exp %38 : vector<8x128xf32>
    %cst_14 = arith.constant 1.000000e+00 : f32
    %40 = vector.broadcast %cst_14 : f32 to vector<8x128xf32>
    %41 = arith.addf %40, %39 : vector<8x128xf32>
    %42 = arith.divf %40, %41 : vector<8x128xf32>
    %43 = math.tanh %37 : vector<8x128xf32>
    %44 = arith.mulf %42, %43 : vector<8x128xf32>
    %45 = vector.extract_strided_slice %44 {offsets = [0, 0], sizes = [8, 64], strides = [1, 1]} : vector<8x128xf32> to vector<8x64xf32>
    %cst_15 = arith.constant 0.000000e+00 : f32
    %46 = vector.broadcast %cst_15 : f32 to vector<8x64xf32>
    %47 = arith.maximumf %45, %46 : vector<8x64xf32>
    %48 = arith.addf %21, %47 : vector<8x64xf32>
    %cst_16 = arith.constant 0.000000e+00 : f32
    %49 = vector.broadcast %cst_16 : f32 to vector<8x64xf32>
    %50 = arith.maximumf %45, %49 : vector<8x64xf32>
    %51 = arith.addf %50, %48 : vector<8x64xf32>
    %52 = arith.truncf %51 : vector<8x64xf32> to vector<8x64xbf16>
    %c0_17 = arith.constant 0 : index
    %c0_18 = arith.constant 0 : index
    %53 = vector.load %arg6[%c0_17, %c0_18] : memref<64x256xbf16, #tpu.memory_space<vmem>>, vector<64x256xbf16>
    %cst_19 = arith.constant dense<0.000000e+00> : vector<8x256xf32>
    %54 = tpu.matmul %52, %53, %cst_19 {dimension_numbers = #tpu.dot_dimension_numbers<[1], [0], [0], [1], [0, 0, 1, 1], [], []>} : vector<8x64xbf16>, vector<64x256xbf16>, vector<8x256xf32> -> vector<8x256xf32>
    %c0_20 = arith.constant 0 : index
    %c0_21 = arith.constant 0 : index
    %55 = vector.load %arg8[%c0_20, %c0_21] : memref<1x256xf32, #tpu.memory_space<vmem>>, vector<1x256xf32>
    %56 = vector.broadcast %55 : vector<1x256xf32> to vector<8x256xf32>
    %57 = arith.addf %54, %56 : vector<8x256xf32>
    %58 = vector.extract_strided_slice %57 {offsets = [0, 0], sizes = [8, 128], strides = [1, 1]} : vector<8x256xf32> to vector<8x128xf32>
    %59 = vector.extract_strided_slice %57 {offsets = [0, 128], sizes = [8, 128], strides = [1, 1]} : vector<8x256xf32> to vector<8x128xf32>
    %60 = arith.negf %58 : vector<8x128xf32>
    %61 = math.exp %60 : vector<8x128xf32>
    %cst_22 = arith.constant 1.000000e+00 : f32
    %62 = vector.broadcast %cst_22 : f32 to vector<8x128xf32>
    %63 = arith.addf %62, %61 : vector<8x128xf32>
    %64 = arith.divf %62, %63 : vector<8x128xf32>
    %c64_i32_23 = arith.constant 64 : i32
    %65 = tpu.dynamic_rotate %58 by %c64_i32_23 dim 1 : vector<8x128xf32>, i32 -> vector<8x128xf32>
    %66 = math.tanh %65 : vector<8x128xf32>
    %67 = arith.mulf %64, %66 : vector<8x128xf32>
    %68 = arith.negf %59 : vector<8x128xf32>
    %69 = math.exp %68 : vector<8x128xf32>
    %cst_24 = arith.constant 1.000000e+00 : f32
    %70 = vector.broadcast %cst_24 : f32 to vector<8x128xf32>
    %71 = arith.addf %70, %69 : vector<8x128xf32>
    %72 = arith.divf %70, %71 : vector<8x128xf32>
    %73 = math.tanh %67 : vector<8x128xf32>
    %74 = arith.mulf %72, %73 : vector<8x128xf32>
    %75 = vector.extract_strided_slice %74 {offsets = [0, 0], sizes = [8, 64], strides = [1, 1]} : vector<8x128xf32> to vector<8x64xf32>
    %76 = vector.extract_strided_slice %75 {offsets = [7, 0], sizes = [1, 32], strides = [1, 1]} : vector<8x64xf32> to vector<1x32xf32>
    %cst_25 = arith.constant 0.000000e+00 : f32
    %77 = vector.broadcast %cst_25 : f32 to vector<1x32xf32>
    %78 = arith.maximumf %76, %77 : vector<1x32xf32>
    %79 = vector.extract_strided_slice %75 {offsets = [0, 32], sizes = [1, 32], strides = [1, 1]} : vector<8x64xf32> to vector<1x32xf32>
    %cst_26 = arith.constant 0.000000e+00 : f32
    %80 = vector.broadcast %cst_26 : f32 to vector<1x32xf32>
    %81 = arith.maximumf %79, %80 : vector<1x32xf32>
    %82 = tpu.concatenate %78, %81 in 1 : vector<1x32xf32>, vector<1x32xf32> -> vector<1x64xf32>
    %c0_27 = arith.constant 0 : index
    %c0_28 = arith.constant 0 : index
    %c0_29 = arith.constant 0 : index
    %83 = vector.load %arg2[%c0_27, %c0_28, %c0_29] : memref<1x4x1xi32, #tpu.memory_space<vmem>>, vector<1x4x1xi32>
    %84 = vector.shape_cast %83 : vector<1x4x1xi32> to vector<4x1xi32>
    %85 = tpu.iota {dimensions = array<i32: 1>} : vector<4x86xi32>
    %86 = vector.broadcast %84 : vector<4x1xi32> to vector<4x86xi32>
    %87 = arith.cmpi eq, %85, %86 : vector<4x86xi32>
    %88 = arith.extui %87 : vector<4x86xi1> to vector<4x86xi32>
    %89 = arith.sitofp %88 : vector<4x86xi32> to vector<4x86xf32>
    %90 = arith.truncf %89 : vector<4x86xf32> to vector<4x86xbf16>
    %91 = arith.extf %90 : vector<4x86xbf16> to vector<4x86xf32>
    %cst_30 = arith.constant dense<0.000000e+00> : vector<86xf32>
    %92 = vector.multi_reduction <add>, %91, %cst_30 [0] : vector<4x86xf32> to vector<86xf32>
    %93 = vector.shape_cast %92 : vector<86xf32> to vector<1x86xf32>
    %94 = arith.truncf %93 : vector<1x86xf32> to vector<1x86xbf16>
    %c0_31 = arith.constant 0 : index
    %c0_32 = arith.constant 0 : index
    %95 = vector.load %arg4[%c0_31, %c0_32] : memref<86x64xbf16, #tpu.memory_space<vmem>>, vector<86x64xbf16>
    %cst_33 = arith.constant dense<0.000000e+00> : vector<1x64xf32>
    %96 = tpu.matmul %94, %95, %cst_33 {dimension_numbers = #tpu.dot_dimension_numbers<[1], [0], [0], [1], [0, 0, 1, 1], [], []>} : vector<1x86xbf16>, vector<86x64xbf16>, vector<1x64xf32> -> vector<1x64xf32>
    %c0_i32 = arith.constant 0 : i32
    %97 = vector.broadcast %c0_i32 : i32 to vector<4x1xi32>
    %98 = arith.cmpi sge, %84, %97 : vector<4x1xi32>
    %99 = arith.extui %98 : vector<4x1xi1> to vector<4x1xi32>
    %100 = arith.sitofp %99 : vector<4x1xi32> to vector<4x1xf32>
    %101 = vector.shape_cast %100 : vector<4x1xf32> to vector<1x4x1xf32>
    %cst_34 = arith.constant dense<0.000000e+00> : vector<1xf32>
    %102 = vector.multi_reduction <add>, %101, %cst_34 [1, 2] : vector<1x4x1xf32> to vector<1xf32>
    %103 = vector.shape_cast %102 : vector<1xf32> to vector<1x1x1xf32>
    %104 = vector.extract %103[0, 0, 0] : f32 from vector<1x1x1xf32>
    %cst_35 = arith.constant 0.000000e+00 : f32
    %105 = arith.cmpf ogt, %104, %cst_35 : f32
    %cst_36 = arith.constant 0.699999988 : f32
    %106 = vector.broadcast %cst_36 : f32 to vector<1x64xf32>
    %107 = arith.mulf %106, %82 : vector<1x64xf32>
    %cst_37 = arith.constant 3.000000e-01 : f32
    %108 = vector.broadcast %cst_37 : f32 to vector<1x64xf32>
    %109 = arith.mulf %108, %96 : vector<1x64xf32>
    %cst_38 = arith.constant 1.000000e+00 : f32
    %110 = arith.maximumf %104, %cst_38 : f32
    %111 = vector.broadcast %110 : f32 to vector<1x64xf32>
    %112 = arith.divf %109, %111 : vector<1x64xf32>
    %113 = arith.addf %107, %112 : vector<1x64xf32>
    %114 = arith.select %105, %113, %82 : vector<1x64xf32>
    %cst_39 = arith.constant 0.000000e+00 : f32
    %115 = vector.broadcast %cst_39 : f32 to vector<8x128xf32>
    %c0_40 = arith.constant 0 : index
    %c0_41 = arith.constant 0 : index
    %c0_42 = arith.constant 0 : index
    %116 = vector.load %arg9[%c0_40, %c0_41, %c0_42] : memref<1x8x128xf32, #tpu.memory_space<vmem>>, vector<1x8x128xf32>
    %117 = vector.shape_cast %116 : vector<1x8x128xf32> to vector<8x128xf32>
    %118 = vector.shape_cast %115 : vector<8x128xf32> to vector<1x8x128xf32>
    tpu.vector_store %arg9[%c0_40, %c0_41, %c0_42], %118 {strides = array<i32>} : memref<1x8x128xf32, #tpu.memory_space<vmem>>, vector<1x8x128xf32>,
    %119 = tpu.concatenate %114, %82 in 0 : vector<1x64xf32>, vector<1x64xf32> -> vector<2x64xf32>
    %c0_43 = arith.constant 0 : index
    %c0_44 = arith.constant 0 : index
    %c0_45 = arith.constant 0 : index
    %120 = vector.load %arg9[%c0_43, %c0_44, %c0_45] : memref<1x8x128xf32, #tpu.memory_space<vmem>>, vector<1x2x64xf32>
    %121 = vector.shape_cast %120 : vector<1x2x64xf32> to vector<2x64xf32>
    %122 = vector.shape_cast %119 : vector<2x64xf32> to vector<1x2x64xf32>
    tpu.vector_store %arg9[%c0_43, %c0_44, %c0_45], %122 {strides = array<i32>} : memref<1x8x128xf32, #tpu.memory_space<vmem>>, vector<1x2x64xf32>,
    return
  }
  func.func @transform_0(%arg0: i32) -> (i32, i32, i32) {
    %c0_i32 = arith.constant 0 : i32
    %c0_i32_0 = arith.constant 0 : i32
    %c0_i32_1 = arith.constant 0 : i32
    return %arg0, %c0_i32, %c0_i32_0 : i32, i32, i32
  }
  func.func @transform_1(%arg0: i32) -> (i32, i32, i32) {
    %c0_i32 = arith.constant 0 : i32
    %c0_i32_0 = arith.constant 0 : i32
    %c0_i32_1 = arith.constant 0 : i32
    return %arg0, %c0_i32, %c0_i32_0 : i32, i32, i32
  }
  func.func @transform_2(%arg0: i32) -> (i32, i32) {
    %c0_i32 = arith.constant 0 : i32
    %c0_i32_0 = arith.constant 0 : i32
    %c0_i32_1 = arith.constant 0 : i32
    return %c0_i32, %c0_i32_0 : i32, i32
  }
  func.func @transform_3(%arg0: i32) -> (i32, i32) {
    %c0_i32 = arith.constant 0 : i32
    %c0_i32_0 = arith.constant 0 : i32
    %c0_i32_1 = arith.constant 0 : i32
    return %c0_i32, %c0_i32_0 : i32, i32
  }
  func.func @transform_4(%arg0: i32) -> (i32, i32) {
    %c0_i32 = arith.constant 0 : i32
    %c0_i32_0 = arith.constant 0 : i32
    %c0_i32_1 = arith.constant 0 : i32
    return %c0_i32, %c0_i32_0 : i32, i32
  }
  func.func @transform_5(%arg0: i32) -> (i32, i32) {
    %c0_i32 = arith.constant 0 : i32
    %c0_i32_0 = arith.constant 0 : i32
    %c0_i32_1 = arith.constant 0 : i32
    return %c0_i32, %c0_i32_0 : i32, i32
  }
  func.func @transform_6(%arg0: i32) -> (i32, i32) {
    %c0_i32 = arith.constant 0 : i32
    %c0_i32_0 = arith.constant 0 : i32
    %c0_i32_1 = arith.constant 0 : i32
    return %c0_i32, %c0_i32_0 : i32, i32
  }
  func.func @transform_7(%arg0: i32) -> (i32, i32) {
    %c0_i32 = arith.constant 0 : i32
    %c0_i32_0 = arith.constant 0 : i32
    %c0_i32_1 = arith.constant 0 : i32
    return %c0_i32, %c0_i32_0 : i32, i32
  }
  func.func @transform_8(%arg0: i32) -> (i32, i32, i32) {
    %c0_i32 = arith.constant 0 : i32
    %c0_i32_0 = arith.constant 0 : i32
    %c0_i32_1 = arith.constant 0 : i32
    return %arg0, %c0_i32, %c0_i32_0 : i32, i32, i32
  }
}

</mosaic_0001>

<bundles_post_ra>
// kernel: encoder_forward.1
= control target key start
LH: loop header
LB: loop body
LE: loop exit
PB: predicated region body
PF: predicated region fallthrough
CT: control target
= control target key end

     0   :  { %s1167_s27 = smov 0   ;;  %s1332_s0 = inlined_call_operand.vmem [shape: s32[4,8,1], index: 0, kind: input, shape index: {}]   ;;  %s1333_s1 = inlined_call_operand.vmem [shape: s32[4,4,1], index: 1, kind: input, shape index: {}]   ;;  %s1334_s2 = inlined_call_operand.vmem [shape: bf16[100,32], index: 2, kind: input, shape index: {}]   ;;  %s1335_s3 = inlined_call_operand.vmem [shape: bf16[86,64], index: 3, kind: input, shape index: {}]   ;;  %s1336_s4 = inlined_call_operand.vmem [shape: bf16[64,256], index: 4, kind: input, shape index: {}]   ;;  %s1337_s5 = inlined_call_operand.vmem [shape: bf16[64,256], index: 5, kind: input, shape index: {}]   ;;  %s1338_s6 = inlined_call_operand.vmem [shape: f32[1,256], index: 6, kind: input, shape index: {}]   ;;  %s1339_s7 = inlined_call_operand.vmem [shape: f32[1,256], index: 7, kind: input, shape index: {}]   ;;  %s1340_s8 = inlined_call_operand.vmem [shape: f32[4,8,128], index: 8, kind: output, shape index: {}]  }
   0x1 LB: > { %s924_s28 = sadd.s32 4294967295, %s1114_s27   ;;  %p928_p0 = scmp.ge.s32.totalorder %s1114_s27, 1  ;;  %s1114_s27 = sphi %s1167_s27, %s18_s27  }
   0x2   : > { %p270_p1 = scmp.lt.s32.totalorder %s1114_s27, 5 }
   0x4   : > { %p271_p2 = pnand %p928_p0, %p270_p1 }
   0x5   : > { %p306_p3 = scmp.lt.s32.totalorder (!%p271_p2), %s924_s28, 3  ;;  %v1041_v0 = vld [vmem:[%s1334_s2] sm:$0xff] (!%p271_p2)   ;;  %v1116_v1 = vmov (!%p271_p2), 0   ;;  %v1117_v2 = vmov (!%p271_p2), 0.0   ;;  %v1042_v3 = vld [vmem:[%s1334_s2 + $0x8] sm:$0xff] (!%p271_p2)   ;;  %v1043_v5 = vld [vmem:[%s1334_s2 + $0x10] sm:$0xff] (!%p271_p2)   ;;  %v320_v11 = vlaneseq (!%p271_p2) }
   0x6   : > { %274 = sbr.rel (%p271_p2) target bundleno = 1256 (0x4e8), region = 52  ;;  %1039 = vset.pattern.permute.xlu0 (!%p271_p2), %v1116_v1  ;;  %989 = vmatprep.subr.bf16.mxu0 (!%p271_p2), %v1117_v2  ;;  %v1044_v6 = vld [vmem:[%s1334_s2 + $0x18] sm:$0xff] (!%p271_p2)   ;;  %vm1118_vm0 = vmmov (!%p271_p2), 0   ;;  %v1045_v7 = vld [vmem:[%s1334_s2 + $0x20] sm:$0xff] (!%p271_p2)   ;;  %v1046_v8 = vld [vmem:[%s1334_s2 + $0x28] sm:$0xff] (!%p271_p2)   ;;  %vm385_vm1 = vcmask (!%p271_p2), 1041408  }
   0x7   : > { %990 = vmatpush3.bf16.msra.mxu0 (!%p271_p2), %v1041_v0  ;;  %551 = vmatprep.mubr.bf16.mxu1 (!%p271_p2), %v1116_v1  ;;  %v1047_v9 = vld [vmem:[%s1334_s2 + $0x30] ss:$0 sps:$4 sm:$0x33] (!%p271_p2)   ;;  %v1222_v12 = vand.u32 (!%p271_p2), 127, %v320_v11  ;;  %vm381_vm3 = vcmask (!%p271_p2), 818176   ;;  %vm430_vm4 = vcmask (!%p271_p2), 261120  }
   0x8   : > { %991 = vmatprep.subr.bf16.mxu0 (!%p271_p2), %v1117_v2  ;;  %1040 = vset.pattern.permute.xlu1 (!%p271_p2), %v1116_v1  ;;  %v387_v10 = vsel (!%p271_p2), %vm385_vm1, %v1047_v9, 0  ;;  %v1048_v16 = vld [vmem:[%s1336_s4 + $0x4] ss:$8 sps:$4 sm:$0xff] (!%p271_p2)   ;;  %v1050_v17 = vld [vmem:[%s1336_s4] ss:$8 sps:$4 sm:$0xff] (!%p271_p2)   ;;  %s1119_s25 = smov (!%p271_p2), 32  }
   0x9   : > { %1003 = vmatprep.mubr.msk.bf16.mxu0 (!%p271_p2), %vm1118_vm0, %v1117_v2  ;;  %v1051_v18 = vld [vmem:[%s1336_s4 + $0x14] ss:$8 sps:$4 sm:$0xff] (!%p271_p2)   ;;  %519 = vmatprep.subr.bf16.mxu1 (!%p271_p2), %v1048_v16  ;;  %v1053_v19 = vld [vmem:[%s1336_s4 + $0x10] ss:$8 sps:$4 sm:$0xff] (!%p271_p2)   ;;  %v1054_v20 = vld [vmem:[%s1336_s4 + $0x24] ss:$8 sps:$4 sm:$0xff] (!%p271_p2)  }
   0xa   : > { %520 = vmatpush1.bf16.msra.mxu1 (!%p271_p2), %v1050_v17  ;;  %v1056_v21 = vld [vmem:[%s1336_s4 + $0x20] ss:$8 sps:$4 sm:$0xff] (!%p271_p2)   ;;  %v1057_v22 = vld [vmem:[%s1336_s4 + $0x34] ss:$8 sps:$4 sm:$0xff] (!%p271_p2)   ;;  %v1059_v41 = vld [vmem:[%s1336_s4 + $0x30] ss:$8 sps:$4 sm:$0xff] (!%p271_p2)  }
   0xb   : > { %992 = vmatpush3.bf16.msra.mxu0 (!%p271_p2), %v1042_v3  ;;  %521 = vmatprep.subr.bf16.mxu1 (!%p271_p2), %v1051_v18  ;;  %vm515_vm7 = vcmask (!%p271_p2), 523264   ;;  %v1256_v48 = vshrl.u32 (!%p271_p2), %v320_v11, 7  ;;  %v463_v50 = vld [vmem:[%s1338_s6] sm:$0x3] (!%p271_p2)  ;;  %s1120_s30 = smov (!%p271_p2), 64   ;;  %vm822_vm9 = vcmask (!%p271_p2), 3072  }
   0xc   : > { %993 = vmatprep.subr.bf16.mxu0 (!%p271_p2), %v1117_v2  ;;  %v1060_v57 = vld [vmem:[%s1337_s5] ss:$8 sps:$4 sm:$0xff] (!%p271_p2)   ;;  %v1062_v58 = vld [vmem:[%s1337_s5 + $0x4] ss:$8 sps:$4 sm:$0xff] (!%p271_p2)   ;;  %v1065_v59 = vld [vmem:[%s1337_s5 + $0x14] ss:$8 sps:$4 sm:$0xff] (!%p271_p2)  }
   0xd   : > { %s1342_s28 = smov (!%p306_p3, %s924_s28), 3  ;;  %v467_v49 = vsub.s32 0, %v1256_v48  ;;  %v1063_v61 = vld [vmem:[%s1337_s5 + $0x10] ss:$8 sps:$4 sm:$0xff]   ;;  %v1068_v62 = vld [vmem:[%s1337_s5 + $0x24] ss:$8 sps:$4 sm:$0xff]  }
   0xe   : > { %s929_s11 = sshll.u32 %s1342_s28, 3  ;;  %522 = vmatpush1.bf16.msra.mxu1 %v1053_v19  ;;  %v1066_v63 = vld [vmem:[%s1337_s5 + $0x20] ss:$8 sps:$4 sm:$0xff]   ;;  %v1071_v0 = vld [vmem:[%s1337_s5 + $0x34] ss:$8 sps:$4 sm:$0xff]   ;;  %vm775_vm10 = vcmask 1042432  }
   0xf   : > { %s309_s14 = scalar_lea.vmem %s1332_s0, %s929_s11  ;;  %s1195_s17 = scalar_lea.vmem %s1340_s8, %s929_s11  ;;  %994 = vmatpush3.bf16.msra.mxu0 %v1043_v5  ;;  %523 = vmatprep.subr.bf16.mxu1 %v1054_v20  ;;  %v468_v51 = vrot.slane %v463_v50, %v467_v49  ;;  %v1072_v3 = vld [vmem:[%s1335_s3] sm:$0xff]   ;;  %v1073_v5 = vld [vmem:[%s1335_s3 + $0x8] sm:$0xff]   ;;  %vm718_vm11 = vcmask 699392   ;;  %vm771_vm13 = vcmask 703488   ;;  %vm855_vm15 = vcmask 1040384  }
  0x10   : > { %v319_v4 = vld [vmem:[%s309_s14] sm:$0xff]  ;;  %848 = vst [vmem:[%s1195_s17] sm:$0xff] %v1117_v2  ;;  %995 = vmatprep.subr.bf16.mxu0 %v1117_v2  ;;  %s930_s11 = sshll.u32 %s1342_s28, 2 }
  0x11   : > { %323 = vperm.xlu0 %1039, %v319_v4   ;;  %s313_s16 = scalar_lea.vmem %s1333_s1, %s930_s11  ;;  %v1076_v9 = vld [vmem:[%s1335_s3 + $0x20] sm:$0xff]  }
  0x12   : > { %524 = vmatpush1.bf16.msra.mxu1 %v1056_v21  ;;  %v709_v60 = vld [vmem:[%s313_s16] sm:$0xf] }
  0x13   : > { %996 = vmatpush3.bf16.msra.mxu0 %v1044_v6  ;;  %525 = vmatprep.subr.bf16.mxu1 %v1057_v22  ;;  %vm819_vm8 = vcmp.ge.s32.totalorder %v709_v60, 0 }
  0x14   : > { %997 = vmatprep.subr.bf16.mxu0 %v1117_v2  ;;  %v971_v4 = vsel %vm819_vm8, 1.0, %v1117_v2 }
  0x15   : > { %v823_v6 = vsel %vm822_vm9, %v971_v4, 0.0 }
  0x16   : > { %526 = vmatpush1.bf16.msra.mxu1 %v1059_v41 }
  0x17   : > { %998 = vmatpush3.bf16.msra.mxu0 %v1045_v7  ;;  %645 = vmatprep.subr.bf16.mxu1 %v1062_v58  ;;  %v1074_v7 = vld [vmem:[%s1335_s3 + $0x10] sm:$0xff]  }
  0x18   : > { %999 = vmatprep.subr.bf16.mxu0 %v1117_v2 }
  0x1b   : > { %1000 = vmatpush3.bf16.msra.mxu0 %v1046_v8  ;;  %v1075_v8 = vld [vmem:[%s1335_s3 + $0x18] sm:$0xff]  }
  0x1c   : > { %1001 = vmatprep.subr.bf16.mxu0 %v1117_v2 }
  0x1f   : > { %1002 = vmatpush3.bf16.msra.mxu0 %v387_v10  ;;  %v1077_v10 = vld [vmem:[%s1335_s3 + $0x28] ss:$0 sps:$4 sm:$0x77]  }
  0x20   : > { %1007 = vmatprep.subr.bf16.mxu0 %v1117_v2  ;;  %v777_v11 = vsel %vm775_vm10, %v1077_v10, 0 }
  0x90   : > { %v324_v13 = vpop.permute.xlu0 %323 }
  0x91   : > { %vm325_vm2 = vcmp.eq.s32.totalorder %v1222_v12, %v324_v13 }
  0x92   : > { %v932_v14 = vsel %vm325_vm2, 1.0, %v1117_v2 }
  0x93   : > { %v328_v15 = vpack.c.bf16 %v932_v14, %v932_v14  ;;  %v471_v14 = vsub.s32 1, %v1256_v48 }
  0x95   : > { %1004 = vmatmul.mubr.msk.bf16.vlgmr.msra.gmra.mrb[0].mxu0 %vm381_vm3, %v328_v15  ;;  %v472_v15 = vrot.slane %v463_v50, %v471_v14 }
  0x96   : > { %1019 = vmatprep.mubr.msk.bf16.mxu0 %vm1118_vm0, %v1117_v2  ;;  %1008 = vmatpush3.bf16.msra.mxu0 %v1072_v3  ;;  %vm857_vm0 = vcmask 517120  }
  0x97   : > { %1009 = vmatprep.subr.bf16.mxu0 %v1117_v2 }
  0x9a   : > { %1010 = vmatpush3.bf16.msra.mxu0 %v1073_v5 }
  0x9b   : > { %1011 = vmatprep.subr.bf16.mxu0 %v1117_v2 }
  0x9e   : > { %1012 = vmatpush3.bf16.msra.mxu0 %v1074_v7 }
  0x9f   : > { %1013 = vmatprep.subr.bf16.mxu0 %v1117_v2 }
  0xa2   : > { %1014 = vmatpush3.bf16.msra.mxu0 %v1075_v8 }
  0xa3   : > { %1015 = vmatprep.subr.bf16.mxu0 %v1117_v2 }
  0xa6   : > { %1016 = vmatpush3.bf16.msra.mxu0 %v1076_v9 }
  0xa7   : > { %1017 = vmatprep.subr.bf16.mxu0 %v1117_v2 }
  0xaa   : > { %1018 = vmatpush3.bf16.msra.mxu0 %v777_v11 }
 0x168   : > { %v423_v23 = vpop.f32.mrb[0].mxu0 }
 0x169   : > { %v429_v24 = vmul.f32 %v423_v23, %v423_v23  ;;  %v1005_v25 = vpop.f32.mrb[1].mxu0 }
 0x16a   : > { %v426_v26 = vpop.f32.mrb[2].mxu0 }
 0x16b   : > { %v431_v27 = vsel %vm430_vm4, %v429_v24, 0.0  ;;  %v1006_v28 = vpop.f32.mrb[3].mxu0 }
 0x16c   : > { %v432_v29 = vrot.slane %v431_v27, 4 }
 0x16e   : > { %v433_v30 = vadd.f32 %v432_v29, %v431_v27 }
 0x170   : > { %v434_v31 = vrot.slane %v433_v30, 2 }
 0x172   : > { %v435_v32 = vadd.f32 %v434_v31, %v433_v30 }
 0x174   : > { %v436_v33 = vrot.slane %v435_v32, 1 }
 0x176   : > { %v437_v34 = vadd.f32 %v436_v33, %v435_v32 }
 0x178   : > { %1078 = vrsqrt.f32 %v437_v34  ;;  %vm440_vm5 = vcmp.eq.f32.partialorder %v437_v34, inf  ;;  %v443_v37 = vand.u32 2147483648, %v437_v34  ;;  %vm442_vm6 = vcmp.eq.f32.partialorder %v437_v34, 0.0 }
 0x182   : > { %v1079_v35 = vpop.eup %1078 }
 0x183   : > { %v439_v36 = vmul.f32 %v1079_v35, %v437_v34 }
 0x185   : > { %v441_v38 = vsel %vm440_vm5, %v437_v34, %v439_v36 }
 0x186   : > { %v444_v39 = vsel %vm442_vm6, %v443_v37, %v441_v38 }
 0x187   : > { %v445_v40 = vmax.f32 %v444_v39, 1e-12 }
 0x189   : > { %1080 = vrcp.f32 %v445_v40 }
 0x193   : > { %v1081_v42 = vpop.eup %1080 }
 0x194   : > { %v447_v43 = vmul.f32 %v1081_v42, %v423_v23 }
 0x196   : > { %v448_v44 = vmax.f32 %v447_v43, 0.0 }
 0x198   : > { %450 = vrot.lane.b32.xlu0 %v448_v44, %s1119_s25  ;;  %s1121_s25 = smov 1.0  }
 0x1b7   : > { %824 = vadd.xlane.f32.xlu0 %v823_v6 }
 0x20a   : > { %v451_v45 = vpop.permute.xlu0 %450 }
 0x20b   : > { %v453_v46 = vsel %vm430_vm4, %v448_v44, %v451_v45 }
 0x20c   : > { %v454_v47 = vpack.c.bf16 %v453_v46, %v453_v46 }
 0x20e   : > { %949 = vmatmul.mubr.msk.bf16.vlgmr.msra.gmra.mrb[0].mxu1 %vm515_vm7, %v454_v47  ;;  %v590_v47 = vld [vmem:[%s1339_s7] sm:$0x3] }
 0x20f   : > { %677 = vmatprep.mubr.bf16.mxu1 %v1116_v1  ;;  %646 = vmatpush1.bf16.msra.mxu1 %v1060_v57  ;;  %v1069_v1 = vld [vmem:[%s1337_s5 + $0x30] ss:$8 sps:$4 sm:$0xff]   ;;  %v595_v50 = vrot.slane %v590_v47, %v467_v49 }
 0x210   : > { %647 = vmatprep.subr.bf16.mxu1 %v1065_v59 }
 0x213   : > { %648 = vmatpush1.bf16.msra.mxu1 %v1063_v61  ;;  %v599_v61 = vrot.slane %v590_v47, %v471_v14 }
 0x214   : > { %649 = vmatprep.subr.bf16.mxu1 %v1068_v62 }
 0x217   : > { %650 = vmatpush1.bf16.msra.mxu1 %v1066_v63 }
 0x218   : > { %651 = vmatprep.subr.bf16.mxu1 %v1071_v0 }
 0x21b   : > { %652 = vmatpush1.bf16.msra.mxu1 %v1069_v1 }
 0x2e1   : > { %v553_v52 = vpop.f32.mrb[0].mxu1 }
 0x2e2   : > { %v554_v53 = vadd.f32 %v553_v52, %v468_v51  ;;  %v555_v54 = vpop.f32.mrb[1].mxu1 }
 0x2e3   : > { %v557_v55 = vpop.f32.mrb[2].mxu1  ;;  %v556_v16 = vadd.f32 %v555_v54, %v472_v15 }
 0x2e4   : > { %v558_v56 = vpop.f32.mrb[3].mxu1  ;;  %566 = vrot.lane.b32.xlu1 %v554_v53, %s1120_s30  ;;  %v950_v13 = vmul.f32 -1.442695, %v554_v53 }
 0x2e5   : > { %v951_v17 = vmul.f32 -1.442695, %v556_v16 }
 0x2e6   : > { %1082 = vpow2.f32 %v950_v13 }
 0x2e7   : > { %1084 = vpow2.f32 %v951_v17 }
 0x2e8   : > { %711 = vperm.xlu1 %1040, %v709_v60  }
 0x2f0   : > { %v1083_v18 = vpop.eup %1082 }
 0x2f1   : > { %v563_v19 = vadd.f32 1.0, %v1083_v18  ;;  %v1085_v21 = vpop.eup %1084 }
 0x2f2   : > { %v573_v22 = vadd.f32 1.0, %v1085_v21 }
 0x2f3   : > { %1086 = vrcp.f32 %v563_v19 }
 0x2fd   : > { %v1087_v23 = vpop.eup %1086 }
 0x356   : > { %v567_v20 = vpop.permute.xlu1 %566 }
 0x357   : > { %1088 = vtanh.f32 %v567_v20 }
 0x358   : > { %1090 = vrcp.f32 %v573_v22 }
 0x361   : > { %v1089_v24 = vpop.eup %1088 }
 0x362   : > { %v569_v25 = vmul.f32 %v1089_v24, %v1087_v23  ;;  %v1091_v30 = vpop.eup %1090 }
 0x364   : > { %1092 = vtanh.f32 %v569_v25 }
 0x367   : > { %v712_v26 = vpop.permute.xlu1 %711 }
 0x368   : > { %vm713_vm12 = vcmp.eq.s32.totalorder %v1222_v12, %v712_v26  ;;  %v825_v12 = vpop.xlane.xlu0 %824 }
 0x369   : > { %v963_v27 = vsel %vm713_vm12, 1.0, %v1117_v2  ;;  %v826_v2 = vrot.slane %v825_v12, 4 }
 0x36a   : > { %v719_v28 = vsel %vm718_vm11, %v963_v27, 0.0 }
 0x36b   : > { %v720_v29 = vrot.slane %v719_v28, 4  ;;  %v827_v42 = vadd.f32 %v826_v2, %v825_v12 }
 0x36d   : > { %v721_v31 = vadd.f32 %v720_v29, %v719_v28  ;;  %v828_v43 = vrot.slane %v827_v42, 2 }
 0x36e   : > { %v1093_v32 = vpop.eup %1092 }
 0x36f   : > { %v577_v33 = vmul.f32 %v1093_v32, %v1091_v30  ;;  %v722_v34 = vrot.slane %v721_v31, 2  ;;  %v829_v44 = vadd.f32 %v828_v43, %v827_v42 }
 0x371   : > { %v578_v35 = vmax.f32 %v577_v33, 0.0  ;;  %v723_v36 = vadd.f32 %v722_v34, %v721_v31  ;;  %v830_v45 = vrot.slane %v829_v44, 1 }
 0x373   : > { %v580_v37 = vadd.f32 %v578_v35, %v578_v35  ;;  %v724_v38 = vrot.slane %v723_v36, 1  ;;  %v831_v46 = vadd.f32 %v830_v45, %v829_v44 }
 0x375   : > { %v581_v39 = vpack.c.bf16 %v580_v37, %v580_v37  ;;  %v725_v40 = vadd.f32 %v724_v38, %v723_v36  ;;  %1023 = vpush %v831_v46 }
 0x377   : > { %960 = vmatmul.mubr.msk.bf16.vlgmr.msra.gmra.mrb[4].mxu1 %vm515_vm7, %v581_v39  ;;  %v726_v41 = vpack.c.bf16 %v725_v40, %v725_v40 }
 0x379   : > { %1020 = vmatmul.mubr.msk.bf16.vlgmr.msra.gmra.mrb[4].mxu0 %vm771_vm13, %v726_v41 }
 0x3a6   : > { %s1024_s24 = spop %1023 }
 0x3a7   : > { %p833_p4 = scmp.gt.f32.partialorder %s1024_s24, 0.0 }
 0x3a9   : > { %s844_s26 = scalar_select %p833_p4, 1, 0 }
 0x3ab   : > { %v845_v18 = vstv %s844_s26 }
 0x3ac   : > { %vm846_vm14 = vcmp.eq.s32.totalorder %v845_v18, 1 }
 0x44a   : > { %v679_v51 = vpop.f32.mrb[4].mxu1 }
 0x44b   : > { %v680_v52 = vadd.f32 %v679_v51, %v595_v50  ;;  %v681_v53 = vpop.f32.mrb[5].mxu1 }
 0x44c   : > { %v683_v54 = vpop.f32.mrb[6].mxu1  ;;  %v813_v56 = vpop.f32.mrb[4].mxu0  ;;  %v682_v62 = vadd.f32 %v681_v53, %v599_v61 }
 0x44d   : > { %v684_v55 = vpop.f32.mrb[7].mxu1  ;;  %692 = vrot.lane.b32.xlu1 %v680_v52, %s1120_s30  ;;  %v1021_v57 = vpop.f32.mrb[5].mxu0  ;;  %v961_v60 = vmul.f32 -1.442695, %v680_v52  ;;  %s836_s30 = smax.f32 %s1121_s25, %s1024_s24  ;;  %v835_v10 = vmul.f32 0.3, %v813_v56 }
 0x44e   : > { %v816_v58 = vpop.f32.mrb[6].mxu0  ;;  %v962_v63 = vmul.f32 -1.442695, %v682_v62  ;;  %v837_v7 = vstv %s836_s30 }
 0x44f   : > { %v1022_v59 = vpop.f32.mrb[7].mxu0  ;;  %1094 = vpow2.f32 %v961_v60 }
 0x450   : > { %1096 = vpow2.f32 %v962_v63 }
 0x459   : > { %v1095_v0 = vpop.eup %1094 }
 0x45a   : > { %v689_v1 = vadd.f32 1.0, %v1095_v0  ;;  %v1097_v49 = vpop.eup %1096 }
 0x45b   : > { %v699_v3 = vadd.f32 1.0, %v1097_v49 }
 0x45c   : > { %1098 = vrcp.f32 %v689_v1 }
 0x466   : > { %v1099_v4 = vpop.eup %1098 }
 0x4bf   : > { %v693_v48 = vpop.permute.xlu1 %692 }
 0x4c0   : > { %1100 = vtanh.f32 %v693_v48 }
 0x4c1   : > { %1102 = vrcp.f32 %v699_v3 }
 0x4ca   : > { %v1101_v5 = vpop.eup %1100 }
 0x4cb   : > { %v695_v6 = vmul.f32 %v1101_v5, %v1099_v4  ;;  %v1103_v8 = vpop.eup %1102 }
 0x4cd   : > { %1104 = vtanh.f32 %v695_v6 }
 0x4ce   : > { %1106 = vrcp.f32 %v837_v7 }
 0x4d7   : > { %v1105_v9 = vpop.eup %1104 }
 0x4d8   : > { %v1107_v11 = vpop.eup %1106  ;;  %v703_v13 = vmul.f32 %v1105_v9, %v1103_v8 }
 0x4d9   : > { %v839_v15 = vmul.f32 %v1107_v11, %v835_v10 }
 0x4da   : > { %v704_v14 = vmax.f32 %v703_v13, 0.0 }
 0x4db   : > { %v841_v20 = vrot.slane %v839_v15, 1 }
 0x4dc   : > { %v706_v16 = vrot.slane %v704_v14, 1 }
 0x4de   : > { %v708_v17 = vsel %vm430_vm4, %v704_v14, %v706_v16 }
 0x4df   : > { %v834_v19 = vmul.f32 0.7, %v708_v17  ;;  %v853_v24 = vrot.slane %v708_v17, 6 }
 0x4e1   : > { %v843_v21 = vadd.f32 %v841_v20, %v834_v19 }
 0x4e3   : > { %v847_v22 = vsel %vm846_vm14, %v843_v21, %v708_v17 }
 0x4e4   : > { %v850_v23 = vrot.slane %v847_v22, 7 }
 0x4e6   : > { %v856_v25 = vsel %vm855_vm15, %v850_v23, %v853_v24 }
 0x4e7   : > { %858 = vst.msk [vmem:[%s1195_s17] sm:$0x3] %vm857_vm0, %v856_v25 }
 0x4e8 PF: > { %s18_s27 = sadd.s32 1, %s1114_s27  }
 0x4e9   : > { %p15_p5 = scmp.ge.s32.totalorder %s18_s27, 6  }
 0x4eb   :  { %17 = sbr.rel (!%p15_p5) target bundleno = 1 (0x1), region = 85 }

</bundles_post_ra>
